<compile_context>
chip_gen: v7x
topology: tpu7x:2x2x1
jax: 0.10.0
libtpu: 0.0.40
codegen_flags: <defaults>
</compile_context>

<pallas_src>
import functools

import jax
import jax.numpy as jnp
import numpy as np
from jax.experimental import pallas as pl
from jax.experimental.pallas import tpu as pltpu


def _fold_lanes_to_128(v):
    """(C, n*128) -> (C, 128) by summing 128-wide lane chunks (tree fold).

    n must be a power of two; every slice boundary is a multiple of 128 so
    each step is a plain VPU add on whole vregs (no relayout, no XLU).
    """
    n = v.shape[-1] // 128
    while n > 1:
        half = n // 2
        v = v[:, : half * 128] + v[:, half * 128:]
        n = half
    return v


def _dice_kernel(logits_ref, tgt_ref, inter_ref, union_ref, *,
                 pad_label, needs_mask):
    i = pl.program_id(1)

    @pl.when(i == 0)
    def _():
        inter_ref[...] = jnp.zeros_like(inter_ref)
        union_ref[...] = jnp.zeros_like(union_ref)

    x = logits_ref[0].astype(jnp.float32)            # (C, TM)
    tgt = tgt_ref[0].astype(jnp.int32)               # (1, TM)

    if needs_mask:
        valid = tgt != pad_label                     # (1, TM) bool
        valid_f = valid.astype(jnp.float32)
        # Sanitize: padded / partial-block columns may contain garbage
        # (even NaN/Inf bit patterns) -> zero them before the softmax.
        x = jnp.where(valid, x, 0.0)

    # Numerically-safe softmax over the class (sublane) axis; a single
    # reciprocal on the (1, TM) denominator instead of a per-class divide.
    m = jnp.max(x, axis=0, keepdims=True)            # (1, TM)
    e = jnp.exp(x - m)                               # (C, TM)  (EUP)
    denom = jnp.sum(e, axis=0, keepdims=True)        # (1, TM)
    probs = e * pl.reciprocal(denom)                 # exact reciprocal

    # one-hot(target) along the class axis.
    cls = jax.lax.broadcasted_iota(jnp.int32, x.shape, 0)
    one_hot = (cls == tgt).astype(jnp.float32)       # (C, TM)

    if needs_mask:
        probs = probs * valid_f
        one_hot = one_hot * valid_f

    pi = probs * one_hot                             # intersection terms
    pu = probs + one_hot                             # union terms

    # Lane-dense (C, 128) accumulators resident in the output block: pure
    # VPU adds; the output is written back to HBM only once per batch row.
    inter_ref[0] = inter_ref[0] + _fold_lanes_to_128(pi)
    union_ref[0] = union_ref[0] + _fold_lanes_to_128(pu)


def dice_seg_loss(logits, target, *, num_classes, ignore_index=None,
                  eps=1e-6, tile_m=32768):
    """logits: (B, C, ph, pw, pd) raw scores; target: (B, ph, pw, pd) labels."""
    if target.ndim == logits.ndim:
        target = target[:, 0]
    B, C, ph, pw, pd = logits.shape
    assert C == num_classes
    S = ph * pw * pd

    # Free reshape (no HBM data movement): keep the native channel-first
    # layout, put the flattened spatial axis last (lane-dense).
    logits_bcs = logits.reshape(B, C, S)

    # Effective lane tile: power-of-two multiple of 128, no wider than S
    # (rounded up), capped so one f32 logits block stays <= ~2 MiB (double
    # buffering + live intermediates then fit every generation's VMEM).
    cap_n = max(1, (2 * 1024 * 1024) // (C * 4 * 128))
    req_n = max(1, int(tile_m) // 128)
    n128 = pl.cdiv(S, 128)
    tm_n = max(1, min(req_n, cap_n, n128))
    tm_n = 1 << (tm_n.bit_length() - 1)              # largest power of 2 <=
    tm = tm_n * 128

    n_chunks = pl.cdiv(S, tm)
    s_pad = n_chunks * tm

    # Sentinel label masks both padded columns and ignore_index voxels.
    pad_label = ignore_index if ignore_index is not None else num_classes
    use_int8 = (num_classes <= 127) and (-128 <= pad_label <= 127)
    tdtype = jnp.int8 if use_int8 else jnp.int32

    tgt = target.reshape(B, 1, S).astype(tdtype)
    if s_pad != S:
        # Only the (tiny) label plane gets padded; logits are read with a
        # partial last block and masked via the target-derived valid mask.
        tgt = jnp.pad(tgt, ((0, 0), (0, 0), (0, s_pad - S)),
                      constant_values=pad_label)
    needs_mask = (ignore_index is not None) or (s_pad != S)

    kernel = functools.partial(
        _dice_kernel, pad_label=int(pad_label), needs_mask=needs_mask)

    inter, union = pl.pallas_call(
        kernel,
        out_shape=(jax.ShapeDtypeStruct((B, C, 128), jnp.float32),
                   jax.ShapeDtypeStruct((B, C, 128), jnp.float32)),
        grid_spec=pltpu.PrefetchScalarGridSpec(
            num_scalar_prefetch=0,
            grid=(B, n_chunks),
            in_specs=[
                pl.BlockSpec((1, C, tm), lambda b, i: (b, 0, i)),
                pl.BlockSpec((1, 1, tm), lambda b, i: (b, 0, i)),
            ],
            out_specs=[
                pl.BlockSpec((1, C, 128), lambda b, i: (b, 0, 0)),
                pl.BlockSpec((1, C, 128), lambda b, i: (b, 0, 0)),
            ],
        ),
        compiler_params=pltpu.CompilerParams(
            dimension_semantics=("parallel", "arbitrary"),
            vmem_limit_bytes=32 * 1024 * 1024),
    )(logits_bcs, tgt)

    # Tiny epilogue in plain JAX: reduce the (B, C, 128) partials and form
    # the scalar Dice loss.
    inter_c = jnp.sum(inter, axis=(0, 2))            # (C,)
    union_c = jnp.sum(union, axis=(0, 2))
    dice = (2.0 * inter_c + eps) / (union_c + eps)
    return 1.0 - jnp.mean(dice)


def _dice_ref(logits, target, num_classes, ignore_index, eps):
    """Pure-JAX reference matching the PyTorch forward."""
    if target.ndim == logits.ndim:
        target = target[:, 0]
    probs = jax.nn.softmax(logits, axis=1)
    one_hot = jnp.transpose(
        jax.nn.one_hot(target, num_classes, dtype=jnp.float32),
        (0, 4, 1, 2, 3))
    if ignore_index is not None:
        valid = (target != ignore_index)[:, None].astype(jnp.float32)
        probs = probs * valid
        one_hot = one_hot * valid
    dims = (0, 2, 3, 4)
    intersection = jnp.sum(probs * one_hot, axis=dims)
    union = jnp.sum(probs + one_hot, axis=dims)
    dice = (2.0 * intersection + eps) / (union + eps)
    return 1.0 - jnp.mean(dice)


if __name__ == "__main__":
    key = jax.random.PRNGKey(0)

    # Test 1: tile-aligned spatial size, no ignore_index (unmasked fast
    # path); force tile_m=256 so the multi-chunk accumulation is exercised.
    k1, k2 = jax.random.split(key)
    B, C, ph, pw, pd = 2, 4, 8, 8, 8
    logits = jax.random.normal(k1, (B, C, ph, pw, pd), dtype=jnp.float32)
    target = jax.random.randint(k2, (B, ph, pw, pd), 0, C, dtype=jnp.int32)

    loss = dice_seg_loss(logits, target, num_classes=C, ignore_index=None,
                         tile_m=256)
    loss = jax.block_until_ready(loss)
    ref = _dice_ref(logits, target, C, None, 1e-6)
    assert np.allclose(np.asarray(loss), np.asarray(ref), rtol=1e-5, atol=1e-5), \
        (float(loss), float(ref))

    # Test 2: non-aligned spatial size + ignore_index (masked / padded path),
    # default (large) tile.
    k3, k4 = jax.random.split(k2)
    B2, ph2, pw2, pd2 = 2, 5, 6, 7
    logits2 = jax.random.normal(k3, (B2, C, ph2, pw2, pd2), dtype=jnp.float32)
    target2 = jax.random.randint(k4, (B2, ph2, pw2, pd2), 0, C, dtype=jnp.int32)

    loss2 = dice_seg_loss(logits2, target2, num_classes=C, ignore_index=1)
    loss2 = jax.block_until_ready(loss2)
    ref2 = _dice_ref(logits2, target2, C, 1, 1e-6)
    assert np.allclose(np.asarray(loss2), np.asarray(ref2), rtol=1e-5, atol=1e-5), \
        (float(loss2), float(ref2))

    # Test 3: default tile path on an aligned size (single chunk per batch).
    loss3 = dice_seg_loss(logits, target, num_classes=C, ignore_index=None)
    loss3 = jax.block_until_ready(loss3)
    assert np.allclose(np.asarray(loss3), np.asarray(ref), rtol=1e-5, atol=1e-5), \
        (float(loss3), float(ref))

    print("KERNEL_OK")
</pallas_src>

<mosaic_0001>
module attributes {stable_mosaic.version = 11 : i64} {
  func.func @_dice_kernel(%arg0: i32, %arg1: i32, %arg2: memref<1x4x256xf32, #tpu.memory_space<vmem>>, %arg3: memref<1x1x256xi8, #tpu.memory_space<vmem>>, %arg4: memref<1x4x128xf32, #tpu.memory_space<vmem>>, %arg5: memref<1x4x128xf32, #tpu.memory_space<vmem>>) attributes {dimension_semantics = [#tpu.dimension_semantics<parallel>, #tpu.dimension_semantics<arbitrary>], iteration_bounds = array<i64: 2, 2>, scalar_prefetch = 0 : i64, scratch_operands = 0 : i64, tpu.core_type = #tpu.core_type<tc>, window_params = [{transform_indices = @transform_0, window_bounds = array<i64: 1, 4, 256>}, {transform_indices = @transform_1, window_bounds = array<i64: 1, 1, 256>}, {transform_indices = @transform_2, window_bounds = array<i64: 1, 4, 128>}, {transform_indices = @transform_3, window_bounds = array<i64: 1, 4, 128>}]} {
    %c0_i32 = arith.constant 0 : i32
    %0 = arith.cmpi eq, %arg1, %c0_i32 : i32
    %1 = arith.extui %0 : i1 to i32
    %c0_i32_0 = arith.constant 0 : i32
    %2 = arith.cmpi ne, %1, %c0_i32_0 : i32
    scf.if %2 {
      %cst_19 = arith.constant 0.000000e+00 : f32
      %43 = vector.broadcast %cst_19 : f32 to vector<1x4x128xf32>
      %c0_20 = arith.constant 0 : index
      %c0_21 = arith.constant 0 : index
      %c0_22 = arith.constant 0 : index
      %44 = vector.load %arg4[%c0_20, %c0_21, %c0_22] : memref<1x4x128xf32, #tpu.memory_space<vmem>>, vector<1x4x128xf32>
      tpu.vector_store %arg4[%c0_20, %c0_21, %c0_22], %43 {strides = array<i32>} : memref<1x4x128xf32, #tpu.memory_space<vmem>>, vector<1x4x128xf32>,
      %cst_23 = arith.constant 0.000000e+00 : f32
      %45 = vector.broadcast %cst_23 : f32 to vector<1x4x128xf32>
      %c0_24 = arith.constant 0 : index
      %c0_25 = arith.constant 0 : index
      %c0_26 = arith.constant 0 : index
      %46 = vector.load %arg5[%c0_24, %c0_25, %c0_26] : memref<1x4x128xf32, #tpu.memory_space<vmem>>, vector<1x4x128xf32>
      tpu.vector_store %arg5[%c0_24, %c0_25, %c0_26], %45 {strides = array<i32>} : memref<1x4x128xf32, #tpu.memory_space<vmem>>, vector<1x4x128xf32>,
    } else {
    }
    %c0 = arith.constant 0 : index
    %c0_1 = arith.constant 0 : index
    %c0_2 = arith.constant 0 : index
    %3 = vector.load %arg2[%c0, %c0_1, %c0_2] : memref<1x4x256xf32, #tpu.memory_space<vmem>>, vector<1x4x256xf32>
    %4 = vector.shape_cast %3 : vector<1x4x256xf32> to vector<4x256xf32>
    %c0_3 = arith.constant 0 : index
    %c0_4 = arith.constant 0 : index
    %c0_5 = arith.constant 0 : index
    %5 = vector.load %arg3[%c0_3, %c0_4, %c0_5] : memref<1x1x256xi8, #tpu.memory_space<vmem>>, vector<1x1x256xi8>
    %6 = vector.shape_cast %5 : vector<1x1x256xi8> to vector<1x256xi8>
    %7 = arith.extsi %6 : vector<1x256xi8> to vector<1x256xi32>
    %cst = arith.constant dense<0xFF800000> : vector<256xf32>
    %8 = vector.multi_reduction <maximumf>, %4, %cst [0] : vector<4x256xf32> to vector<256xf32>
    %9 = vector.shape_cast %8 : vector<256xf32> to vector<1x256xf32>
    %10 = vector.broadcast %9 : vector<1x256xf32> to vector<4x256xf32>
    %11 = arith.subf %4, %10 : vector<4x256xf32>
    %12 = math.exp %11 : vector<4x256xf32>
    %cst_6 = arith.constant dense<0.000000e+00> : vector<256xf32>
    %13 = vector.multi_reduction <add>, %12, %cst_6 [0] : vector<4x256xf32> to vector<256xf32>
    %14 = vector.shape_cast %13 : vector<256xf32> to vector<1x256xf32>
    %15 = tpu.reciprocal %14 : vector<1x256xf32> -> vector<1x256xf32>
    %16 = vector.broadcast %15 : vector<1x256xf32> to vector<4x256xf32>
    %17 = arith.mulf %12, %16 : vector<4x256xf32>
    %18 = tpu.iota {dimensions = array<i32: 0>} : vector<4x256xi32>
    %19 = vector.broadcast %7 : vector<1x256xi32> to vector<4x256xi32>
    %20 = arith.cmpi eq, %18, %19 : vector<4x256xi32>
    %21 = arith.extui %20 : vector<4x256xi1> to vector<4x256xi32>
    %22 = arith.sitofp %21 : vector<4x256xi32> to vector<4x256xf32>
    %23 = arith.mulf %17, %22 : vector<4x256xf32>
    %24 = arith.addf %17, %22 : vector<4x256xf32>
    %c0_7 = arith.constant 0 : index
    %c0_8 = arith.constant 0 : index
    %c0_9 = arith.constant 0 : index
    %25 = vector.load %arg4[%c0_7, %c0_8, %c0_9] : memref<1x4x128xf32, #tpu.memory_space<vmem>>, vector<1x4x128xf32>
    %26 = vector.shape_cast %25 : vector<1x4x128xf32> to vector<4x128xf32>
    %27 = vector.extract_strided_slice %23 {offsets = [0, 0], sizes = [4, 128], strides = [1, 1]} : vector<4x256xf32> to vector<4x128xf32>
    %28 = vector.extract_strided_slice %23 {offsets = [0, 128], sizes = [4, 128], strides = [1, 1]} : vector<4x256xf32> to vector<4x128xf32>
    %29 = arith.addf %27, %28 : vector<4x128xf32>
    %30 = arith.addf %26, %29 : vector<4x128xf32>
    %c0_10 = arith.constant 0 : index
    %c0_11 = arith.constant 0 : index
    %c0_12 = arith.constant 0 : index
    %31 = vector.load %arg4[%c0_10, %c0_11, %c0_12] : memref<1x4x128xf32, #tpu.memory_space<vmem>>, vector<1x4x128xf32>
    %32 = vector.shape_cast %31 : vector<1x4x128xf32> to vector<4x128xf32>
    %33 = vector.shape_cast %30 : vector<4x128xf32> to vector<1x4x128xf32>
    tpu.vector_store %arg4[%c0_10, %c0_11, %c0_12], %33 {strides = array<i32>} : memref<1x4x128xf32, #tpu.memory_space<vmem>>, vector<1x4x128xf32>,
    %c0_13 = arith.constant 0 : index
    %c0_14 = arith.constant 0 : index
    %c0_15 = arith.constant 0 : index
    %34 = vector.load %arg5[%c0_13, %c0_14, %c0_15] : memref<1x4x128xf32, #tpu.memory_space<vmem>>, vector<1x4x128xf32>
    %35 = vector.shape_cast %34 : vector<1x4x128xf32> to vector<4x128xf32>
    %36 = vector.extract_strided_slice %24 {offsets = [0, 0], sizes = [4, 128], strides = [1, 1]} : vector<4x256xf32> to vector<4x128xf32>
    %37 = vector.extract_strided_slice %24 {offsets = [0, 128], sizes = [4, 128], strides = [1, 1]} : vector<4x256xf32> to vector<4x128xf32>
    %38 = arith.addf %36, %37 : vector<4x128xf32>
    %39 = arith.addf %35, %38 : vector<4x128xf32>
    %c0_16 = arith.constant 0 : index
    %c0_17 = arith.constant 0 : index
    %c0_18 = arith.constant 0 : index
    %40 = vector.load %arg5[%c0_16, %c0_17, %c0_18] : memref<1x4x128xf32, #tpu.memory_space<vmem>>, vector<1x4x128xf32>
    %41 = vector.shape_cast %40 : vector<1x4x128xf32> to vector<4x128xf32>
    %42 = vector.shape_cast %39 : vector<4x128xf32> to vector<1x4x128xf32>
    tpu.vector_store %arg5[%c0_16, %c0_17, %c0_18], %42 {strides = array<i32>} : memref<1x4x128xf32, #tpu.memory_space<vmem>>, vector<1x4x128xf32>,
    return
  }
  func.func @transform_0(%arg0: i32, %arg1: i32) -> (i32, i32, i32) {
    %c0_i32 = arith.constant 0 : i32
    %c0_i32_0 = arith.constant 0 : i32
    return %arg0, %c0_i32, %arg1 : i32, i32, i32
  }
  func.func @transform_1(%arg0: i32, %arg1: i32) -> (i32, i32, i32) {
    %c0_i32 = arith.constant 0 : i32
    %c0_i32_0 = arith.constant 0 : i32
    return %arg0, %c0_i32, %arg1 : i32, i32, i32
  }
  func.func @transform_2(%arg0: i32, %arg1: i32) -> (i32, i32, i32) {
    %c0_i32 = arith.constant 0 : i32
    %c0_i32_0 = arith.constant 0 : i32
    %c0_i32_1 = arith.constant 0 : i32
    return %arg0, %c0_i32, %c0_i32_0 : i32, i32, i32
  }
  func.func @transform_3(%arg0: i32, %arg1: i32) -> (i32, i32, i32) {
    %c0_i32 = arith.constant 0 : i32
    %c0_i32_0 = arith.constant 0 : i32
    %c0_i32_1 = arith.constant 0 : i32
    return %arg0, %c0_i32, %c0_i32_0 : i32, i32, i32
  }
}

</mosaic_0001>

<bundles_post_ra>
// kernel: tpu_custom_call.1
= control target key start
LH: loop header
LB: loop body
LE: loop exit
PB: predicated region body
PF: predicated region fallthrough
CT: control target
= control target key end

     0   :  { %9 = vsyncpa [#allocation3], 0  ;;  %s1145_s0 = inlined_call_operand.hbm [shape: f32[2,4,512], index: 0, kind: input, shape index: {}]   ;;  %s1146_s1 = inlined_call_operand.vmem [shape: s8[2,1,512], index: 1, kind: input, shape index: {}]   ;;  %s1147_s2 = inlined_call_operand.hbm [shape: f32[2,4,128], index: 2, kind: output, shape index: {0}]   ;;  %s1148_s3 = inlined_call_operand.hbm [shape: f32[2,4,128], index: 3, kind: output, shape index: {1}]  }
   0x1   :  { %11 = vsyncpa [#allocation3 + $0x1], 0 }
   0x2   :  { %12 = vsyncpa [#allocation4], 0 }
   0x3   :  { %14 = vsyncpa [#allocation4 + $0x1], 0 }
   0x4   :  { %15 = vsyncpa [#allocation7], 0 }
   0x5   :  { %17 = vsyncpa [#allocation7 + $0x1], 0  ;;  %s863_s12 = smov 0   ;;  %s865_s13 = smov 0  }
   0x6   :  { %s867_s14 = smov 0   ;;  %s869_s15 = smov 0  }
   0x7   :  { %s871_s16 = smov 0   ;;  %s873_s17 = smov 0  }
   0x8   :  { %s875_s18 = smov 0   ;;  %s877_s19 = smov 0  }
   0x9   :  { %s879_s20 = smov 0   ;;  %s881_s21 = smov 0  }
   0xa   :  { %s883_s22 = smov 0  }
   0xb LB: > { %s513_s23 = sadd.s32 4294967295, %s836_s22   ;;  %s514_s24 = sadd.s32 4294967294, %s836_s22   ;;  %s836_s22 = sphi %s883_s22, %s23_s22   ;;  %s832_s21 = sphi %s881_s21, %s1176_s21   ;;  %s828_s20 = sphi %s879_s20, %s1175_s20   ;;  %s824_s19 = sphi %s877_s19, %s1174_s19   ;;  %s820_s18 = sphi %s875_s18, %s1173_s18   ;;  %s816_s17 = sphi %s873_s17, %s1172_s17   ;;  %s812_s16 = sphi %s871_s16, %s1171_s16   ;;  %s808_s15 = sphi %s869_s15, %s1170_s15   ;;  %s804_s14 = sphi %s867_s14, %s1169_s14   ;;  %s800_s13 = sphi %s865_s13, %s1168_s13   ;;  %s796_s12 = sphi %s863_s12, %s1167_s12  }
   0xc   : > { %s32_s25 = sadd.s32 1, %s828_s20  ;;  %s35_s26 = sadd.s32 1, %s832_s21 }
   0xd   : > { %p33_p0 = scmp.ge.s32.totalorder %s32_s25, 2  ;;  %s44_s27 = sadd.s32 1, %s816_s17 }
   0xe   : > { %p51_p1 = scmp.ne.s32.totalorder %s816_s17, %s812_s16  ;;  %p52_p2 = scmp.eq.s32.totalorder %s836_s22, 0 }
   0xf   : > { %s1178_s25 = smov (%p33_p0, %s32_s25), 0  ;;  %s1180_s26 = smov (!%p33_p0, %s35_s26), %s832_s21 }
  0x10   : > { %1152 = sst [smem:[#allocation11_spill]] %s1178_s25  ;;  %s40_s28 = ssub.s32 %s828_s20, %s1178_s25 }
  0x11   : > { %p929_p3 = por %p52_p2, %p51_p1  ;;  %p37_p4 = scmp.ge.s32.totalorder %s1180_s26, 2 }
  0x12   : > { %p57_p5 = scmp.ne.s32.totalorder %s812_s16, %s808_s15  ;;  %p58_p6 = scmp.eq.s32.totalorder %s513_s23, 0 }
  0x13   : > { %s98_s30 = sadd.s32 1, %s804_s14  ;;  %s1182_s26 = smov (%p37_p4, %s1180_s26), 0 }
  0x14   : > { %1154 = sst [smem:[#allocation12_spill]] %s1182_s26  ;;  %p937_p7 = por %p58_p6, %p57_p5 }
  0x15   : > { %p108_p8 = scmp.ne.s32.totalorder %s804_s14, %s800_s13  ;;  %s39_s5 = ssub.s32 %s832_s21, %s1182_s26 }
  0x16   : > { %p109_p9 = scmp.eq.s32.totalorder %s513_s23, 3  ;;  %s41_s6 = sor.u32 %s40_s28, %s39_s5 }
  0x17   : > { %p96_p10 = scmp.eq.s32.totalorder %s39_s5, 0  ;;  %p42_p11 = scmp.eq.s32.totalorder %s41_s6, 0 }
  0x18   : > { %p945_p12 = por %p109_p9, %p108_p8  ;;  %p114_p13 = scmp.ne.s32.totalorder %s800_s13, %s796_s12 }
  0x19   : > { %s950_s8 = scalar_select %p96_p10, %s804_s14, %s98_s30  }
  0x1a   : > { %s1156_s7 = scalar_select %p945_p12, 1, 0 }
  0x1b   : > { %s953_s9 = scalar_select %p42_p11, %s816_s17, %s44_s27  }
  0x1c   : > { %p115_p0 = scmp.eq.s32.totalorder %s514_s24, 3  ;;  %p553_p1 = scmp.lt.s32.totalorder %s836_s22, 4 }
  0x1d   : > { %1157 = sst [smem:[#allocation13_spill]] %s953_s9  ;;  %s161_s11 = sand.u32 1, %s816_s17  }
  0x1e   : > { %p958_p2 = por %p115_p0, %p114_p13  ;;  %s517_s15 = sshll.u32 %s161_s11, 3 }
  0x1f   : > { %s518_s23 = sshll.u32 %s828_s20, 1  ;;  %s519_s28 = sshll.u32 %s832_s21, 2 }
  0x20   : > { %s1158_s10 = scalar_select %p958_p2, 1, 0 }
  0x21   : > { %s165_s5 = scalar_lea.vmem [#allocation2], %s517_s15  ;;  %s171_s26 = sadd.s32 %s519_s28, %s518_s23 }
  0x22   : > { %s175_s6 = sshll.u32 %s165_s5, 4  ;;  %s520_s27 = sshll.u32 %s171_s26, 6  ;;  %s965_s6 = int_to_ptr.vmem [resolvable:$true] %s175_s6 }
  0x23   : > { %p969_p4 = pnand %p553_p1, %p929_p3  ;;  %s976_s9 = scalar_lea.hbm %s1145_s0, %s520_s27 }
  0x24   : > { %s162_s15 = scalar_lea.sflag [#allocation3], %s161_s11  ;;  %s652_s26 = scalar_lea.hbm %s976_s9, 128 }
  0x25   : > { %p653_p8 = scmp.ne.s32.totalorder %s976_s9, %s652_s26  ;;  %p654_p3 = pneg %p969_p4 }
  0x26   : > { %s657_s23 = scalar_lea.hbm %s1145_s0, 512  ;;  %p658_p11 = scmp.lt.u32.totalorder %s976_s9, %s1145_s0 }
  0x27   : > { %p655_p9 = pnand %p654_p3, %p653_p8  ;;  %p659_p13 = scmp.lt.u32.totalorder %s657_s23, %s652_s26 }
  0x28   : > { %p661_p1 = scmp.lt.u32.totalorder %s652_s26, %s976_s9 }
  0x29   : > { %p656_p10 = pneg %p655_p9  ;;  %p660_p0 = por %p659_p13, %p658_p11 }
  0x2b   : > { %p662_p5 = por %p661_p1, %p660_p0 }
  0x2d   : > { %p663_p6 = pnand %p662_p5, %p656_p10 }
  0x2f   : > { %666 = shalt.err (!%p663_p6)
}
  0x30   : > { %s667_s11 = scalar_lea.vmem %s965_s6, 128  ;;  %s838_s27 = smov [#allocation2]  }
  0x31   : > { %p668_p8 = scmp.ne.s32.totalorder %s965_s6, %s667_s11  ;;  %s672_s24 = sshll.u32 %s838_s27, 4  ;;  %s673_s24 = int_to_ptr.vmem [resolvable:$false] %s672_s24 }
  0x32   : > { %s674_s25 = scalar_lea.vmem %s673_s24, 256  ;;  %p675_p12 = scmp.lt.s32.totalorder %s965_s6, %s673_s24 }
  0x33   : > { %p670_p9 = pnand %p668_p8, %p654_p3  ;;  %p676_p11 = scmp.lt.s32.totalorder %s674_s25, %s667_s11 }
  0x35   : > { %p671_p2 = pneg %p670_p9  ;;  %p677_p13 = por %p676_p11, %p675_p12 }
  0x37   : > { %p678_p0 = pnand %p677_p13, %p671_p2 }
  0x39   : > { %681 = shalt.err (!%p678_p0)
}
  0x3a   : > { %545 = dma.hbm_to_vmem [thread:$0]  (!%p969_p4), %s976_s9, 128, %s965_s6, %s162_s15  }
  0x3b   : > { %p1160_p5 = scmp.lt.s32.totalorder %s836_s22, 5  ;;  %p1161_p6 = scmp.ge.s32.totalorder %s836_s22, 1 }
  0x3d   : > { %p193_p3 = pnand %p1161_p6, %p1160_p5 }
  0x3e   : > { %s198_s26 = sand.u32 (!%p193_p3), 1, %s812_s16  }
  0x3f   : > { %196 = sbr.rel (%p193_p3) target bundleno = 193 (0xc1), region = 28  ;;  %s522_s29 = sshll.u32 (!%p193_p3), %s198_s26, 3 }
  0x40   : > { %s199_s23 = scalar_lea.sflag (!%p193_p3), [#allocation3], %s198_s26  ;;  %s202_s28 = scalar_lea.vmem (!%p193_p3), [#allocation2], %s522_s29 }
  0x46   : > { %783 = dma.done.wait (%p937_p7), %s199_s23, 128  }
  0x47   : > { %785 = vsyncadd (%p937_p7), %s199_s23, 4294967168  ;;  %s1015_s9 = sand.u32 1, %s800_s13   ;;  %s525_s6 = sshll.u32 %s820_s18, 1 }
  0x48   : > { %s523_s30 = sshll.u32 %s1015_s9, 2  ;;  %p240_p12 = scmp.lt.s32.totalorder %s824_s19, 1 }
  0x49   : > { %p242_p2 = scmp.lt.s32.totalorder %s525_s6, 3  ;;  %s1027_s25 = scalar_lea.vmem [#allocation5], %s523_s30 }
  0x4a   : > { %s241_s15 = scalar_select %p240_p12, %s824_s19, 1 }
  0x4b   : > { %s1184_s6 = smov (!%p242_p2, %s525_s6), 3  ;;  %s1029_s26 = scalar_lea.vmem [#allocation6], %s523_s30 }
  0x4c   : > { %s526_s5 = sshll.u32 %s241_s15, 2  ;;  %p527_p7 = scmp.ne.s32.totalorder %s820_s18, 0 }
  0x4d   : > { %s1021_s11 = sadd.s32 %s526_s5, %s1184_s6  ;;  %v839_v0 = vmov (!%p527_p7), 0.0  }
  0x4e   : > { %s246_s24 = scalar_lea.vmem %s1146_s1, %s1021_s11  ;;  %251 = sbr.rel (%p527_p7) target bundleno = 85 (0x55), region = 36  ;;  %252 = vst [vmem:[%s1027_s25] sm:$0xf] (!%p527_p7), %v839_v0  ;;  %253 = vst [vmem:[%s1029_s26] sm:$0xf] (!%p527_p7), %v839_v0 }
  0x55 PF: > { %v254_v1 = vld [vmem:[%s202_s28] sm:$0xff]  ;;  %vm260_vm0 = vcmask 1043456   ;;  %v306_v23 = vlaneseq  ;;  %v840_v47 = vmov 0.0   ;;  %s532_s23 = sshll.u32 %s824_s19, 6  ;;  %v336_v58 = vld [vmem:[%s1027_s25] sm:$0xf] }
  0x56   : > { %v258_v2 = vcombine.high %v254_v1, %v254_v1  ;;  %v261_v3 = vsel %vm260_vm0, %v254_v1, -inf  ;;  %v255_v29 = vld [vmem:[%s246_s24] sm:$0x3]  ;;  %v343_v59 = vld [vmem:[%s1029_s26] sm:$0xf]  ;;  %s369_s28 = sshll.u32 %s1027_s25, 4  ;;  %s1051_s5 = scalar_lea.hbm %s1147_s2, %s532_s23  ;;  %s1053_s28 = int_to_ptr.vmem [resolvable:$true] %s369_s28 }
  0x57   : > { %v262_v4 = vrot.slane %v261_v3, 4  ;;  %v307_v28 = vshrl.u32 %v306_v23, 7  ;;  %v256_v34 = vunpack.c.0.s8 %v255_v29  ;;  %s382_s6 = sshll.u32 %s1029_s26, 4  ;;  %s1058_s19 = scalar_lea.hbm %s1148_s3, %s532_s23  ;;  %s1060_s6 = int_to_ptr.vmem [resolvable:$true] %s382_s6 }
  0x58   : > { %v268_v5 = vsel %vm260_vm0, %v258_v2, -inf  ;;  %s351_s4 = scalar_lea.sflag [#allocation4], %s1015_s9  ;;  %s682_s24 = scalar_lea.vmem %s1053_s28, 64 }
  0x59   : > { %v263_v6 = vmax.f32 %v261_v3, %v262_v4  ;;  %v269_v7 = vrot.slane %v268_v5, 4  ;;  %v310_v35 = vsub.s32 0, %v307_v28  ;;  %v314_v36 = vsub.s32 4, %v307_v28  ;;  %p683_p4 = scmp.ne.s32.totalorder %s1053_s28, %s682_s24  ;;  %p1162_p10 = scmp.ne.s32.totalorder %s1156_s7, 0 }
  0x5a   : > { %s841_s18 = smov [#allocation5]  }
  0x5b   : > { %v264_v8 = vrot.slane %v263_v6, 2  ;;  %v270_v9 = vmax.f32 %v268_v5, %v269_v7  ;;  %v311_v41 = vrot.slane %v256_v34, %v310_v35  ;;  %v315_v42 = vrot.slane %v256_v34, %v314_v36  ;;  %p684_p1 = pnand %p683_p4, %p1162_p10  ;;  %s686_s29 = sshll.u32 %s841_s18, 4  ;;  %s687_s29 = int_to_ptr.vmem [resolvable:$false] %s686_s29 }
  0x5c   : > { %s688_s30 = scalar_lea.vmem %s687_s29, 128  ;;  %p689_p9 = scmp.lt.s32.totalorder %s1053_s28, %s687_s29 }
  0x5d   : > { %v265_v10 = vmax.f32 %v263_v6, %v264_v8  ;;  %v271_v11 = vrot.slane %v270_v9, 2  ;;  %v319_v44 = vrot.slane %v311_v41, %v310_v35  ;;  %v323_v45 = vrot.slane %v315_v42, %v310_v35  ;;  %p685_p8 = pneg %p684_p1  ;;  %p690_p11 = scmp.lt.s32.totalorder %s688_s30, %s682_s24 }
  0x5f   : > { %v266_v12 = vrot.slane %v265_v10, 1  ;;  %v272_v13 = vmax.f32 %v270_v9, %v271_v11  ;;  %vm324_vm1 = vcmp.eq.s32.totalorder %v307_v28, %v319_v44  ;;  %vm325_vm2 = vcmp.eq.s32.totalorder %v307_v28, %v323_v45  ;;  %p691_p13 = por %p690_p11, %p689_p9 }
  0x60   : > { %v528_v48 = vsel %vm324_vm1, 1.0, %v840_v47  ;;  %v529_v49 = vsel %vm325_vm2, 1.0, %v840_v47 }
  0x61   : > { %v267_v14 = vmax.f32 %v265_v10, %v266_v12  ;;  %v273_v15 = vrot.slane %v272_v13, 1  ;;  %v332_v52 = vcombine.low %v528_v48, %v529_v49  ;;  %p692_p0 = pnand %p691_p13, %p685_p8 }
  0x63   : > { %v274_v16 = vmax.f32 %v272_v13, %v273_v15 }
  0x65   : > { %v277_v17 = vcombine.low %v267_v14, %v274_v16 }
  0x67   : > { %v279_v18 = vsub.f32 %v254_v1, %v277_v17 }
  0x69   : > { %v280_v19 = vmul.f32 1.442695, %v279_v18 }
  0x6b   : > { %646 = vpow2.f32 %v280_v19 }
  0x75   : > { %v647_v20 = vpop.eup %646 }
  0x76   : > { %v283_v21 = vcombine.high %v647_v20, %v647_v20  ;;  %v285_v22 = vsel %vm260_vm0, %v647_v20, 0.0 }
  0x77   : > { %v286_v24 = vrot.slane %v285_v22, 4 }
  0x78   : > { %v292_v25 = vsel %vm260_vm0, %v283_v21, 0.0 }
  0x79   : > { %v287_v26 = vadd.f32 %v286_v24, %v285_v22  ;;  %v293_v27 = vrot.slane %v292_v25, 4 }
  0x7b   : > { %v288_v30 = vrot.slane %v287_v26, 2  ;;  %v294_v31 = vadd.f32 %v293_v27, %v292_v25 }
  0x7d   : > { %v289_v32 = vadd.f32 %v288_v30, %v287_v26  ;;  %v295_v33 = vrot.slane %v294_v31, 2 }
  0x7f   : > { %v290_v37 = vrot.slane %v289_v32, 1  ;;  %v296_v38 = vadd.f32 %v295_v33, %v294_v31 }
  0x81   : > { %v291_v39 = vadd.f32 %v290_v37, %v289_v32  ;;  %v297_v40 = vrot.slane %v296_v38, 1 }
  0x83   : > { %v298_v43 = vadd.f32 %v297_v40, %v296_v38  ;;  %648 = vrcp.f32 %v291_v39 }
  0x85   : > { %650 = vrcp.f32 %v298_v43 }
  0x8d   : > { %v649_v46 = vpop.eup %648 }
  0x8f   : > { %v651_v50 = vpop.eup %650 }
  0x90   : > { %v303_v51 = vcombine.low %v649_v46, %v651_v50 }
  0x92   : > { %v305_v53 = vmul.f32 %v647_v20, %v303_v51 }
  0x94   : > { %v334_v54 = vmul.f32 %v332_v52, %v305_v53  ;;  %v335_v55 = vadd.f32 %v332_v52, %v305_v53 }
  0x96   : > { %v338_v56 = vrot.slane %v334_v54, 4  ;;  %v345_v57 = vrot.slane %v335_v55, 4 }
  0x98   : > { %v340_v60 = vadd.f32 %v338_v56, %v334_v54  ;;  %v347_v61 = vadd.f32 %v345_v57, %v335_v55 }
  0x9a   : > { %v341_v62 = vadd.f32 %v340_v60, %v336_v58  ;;  %v348_v63 = vadd.f32 %v347_v61, %v343_v59 }
  0x9c   : > { %342 = vst [vmem:[%s1027_s25] sm:$0xf] %v341_v62  ;;  %349 = vst [vmem:[%s1029_s26] sm:$0xf] %v348_v63 }
  0x9d   : > { %695 = shalt.err (!%p692_p0)
}
  0x9e   : > { %s696_s25 = scalar_lea.hbm %s1051_s5, 64  ;;  %s700_s15 = scalar_lea.hbm %s1147_s2, 128 }
  0x9f   : > { %p697_p5 = scmp.ne.s32.totalorder %s1051_s5, %s696_s25  ;;  %p701_p12 = scmp.lt.u32.totalorder %s1051_s5, %s1147_s2 }
  0xa0   : > { %p702_p2 = scmp.lt.u32.totalorder %s700_s15, %s696_s25  ;;  %p704_p4 = scmp.lt.u32.totalorder %s696_s25, %s1051_s5 }
  0xa1   : > { %p698_p6 = pnand %p697_p5, %p1162_p10 }
  0xa2   : > { %p703_p7 = por %p702_p2, %p701_p12 }
  0xa3   : > { %p699_p3 = pneg %p698_p6 }
  0xa4   : > { %p705_p1 = por %p704_p4, %p703_p7 }
  0xa6   : > { %p706_p8 = pnand %p705_p1, %p699_p3 }
  0xa8   : > { %709 = shalt.err (!%p706_p8)
}
  0xa9   : > { %538 = dma.vmem_to_hbm [thread:$0]  (%p1162_p10), %s1053_s28, 64, %s1051_s5, %s351_s4  }
  0xaa   : > { %s356_s24 = scalar_lea.sflag [#allocation7], %s1015_s9  ;;  %s710_s18 = scalar_lea.vmem %s1060_s6, 64 }
  0xab   : > { %p711_p9 = scmp.ne.s32.totalorder %s1060_s6, %s710_s18  ;;  %s842_s29 = smov [#allocation6]  }
  0xac   : > { %s714_s30 = sshll.u32 %s842_s29, 4  ;;  %s715_s30 = int_to_ptr.vmem [resolvable:$false] %s714_s30 }
  0xad   : > { %p712_p11 = pnand %p711_p9, %p1162_p10  ;;  %s716_s25 = scalar_lea.vmem %s715_s30, 128 }
  0xae   : > { %p717_p0 = scmp.lt.s32.totalorder %s1060_s6, %s715_s30  ;;  %p718_p5 = scmp.lt.s32.totalorder %s716_s25, %s710_s18 }
  0xaf   : > { %p713_p13 = pneg %p712_p11 }
  0xb0   : > { %p719_p6 = por %p718_p5, %p717_p0 }
  0xb2   : > { %p720_p3 = pnand %p719_p6, %p713_p13 }
  0xb4   : > { %723 = shalt.err (!%p720_p3)
}
  0xb5   : > { %s724_s9 = scalar_lea.hbm %s1058_s19, 64  ;;  %s728_s4 = scalar_lea.hbm %s1148_s3, 128 }
  0xb6   : > { %p725_p12 = scmp.ne.s32.totalorder %s1058_s19, %s724_s9  ;;  %p729_p4 = scmp.lt.u32.totalorder %s1058_s19, %s1148_s3 }
  0xb7   : > { %p730_p1 = scmp.lt.u32.totalorder %s728_s4, %s724_s9  ;;  %p732_p9 = scmp.lt.u32.totalorder %s724_s9, %s1058_s19 }
  0xb8   : > { %p726_p2 = pnand %p725_p12, %p1162_p10 }
  0xb9   : > { %p731_p8 = por %p730_p1, %p729_p4 }
  0xba   : > { %p727_p7 = pneg %p726_p2 }
  0xbb   : > { %p733_p11 = por %p732_p9, %p731_p8 }
  0xbd   : > { %p734_p13 = pnand %p733_p11, %p727_p7 }
  0xbf   : > { %737 = shalt.err (!%p734_p13)
}
  0xc0   : > { %539 = dma.vmem_to_hbm [thread:$0]  (%p1162_p10), %s1060_s6, 64, %s1058_s19, %s356_s24  }
  0xc1 PF: > { %p554_p0 = scmp.ge.s32.totalorder %s836_s22, 2  ;;  %s394_s15 = sand.u32 1, %s796_s12  }
  0xc2   : > { %p1163_p5 = scmp.ne.s32.totalorder %s1158_s10, 0  ;;  %s395_s11 = scalar_lea.sflag [#allocation4], %s394_s15 }
  0xc4   : > { %p547_p6 = pnand %p554_p0, %p1163_p5 }
  0xc6   : > { %787 = dma.done.wait (!%p547_p6), %s395_s11, 64  }
  0xc7   : > { %789 = vsyncadd (!%p547_p6), %s395_s11, 4294967232  ;;  %s404_s27 = scalar_lea.sflag [#allocation7], %s394_s15 }
  0xc8   : > { %791 = dma.done.wait (!%p547_p6), %s404_s27, 64  }
  0xc9   : > { %793 = vsyncadd (!%p547_p6), %s404_s27, 4294967232  ;;  %s23_s22 = sadd.s32 1, %s836_s22   ;;  %s1164_s7 = sld [smem:[#allocation13_spill]] }
  0xca   : > { %p20_p3 = scmp.ge.s32.totalorder %s23_s22, 6   ;;  %s1165_s6 = sld [smem:[#allocation11_spill]] }
  0xcb   : > { %s1166_s10 = sld [smem:[#allocation12_spill]]  ;;  %s1167_s12 = smov %s800_s13 }
  0xcc   : > { %s1168_s13 = smov %s804_s14  ;;  %s1169_s14 = smov %s950_s8 }
  0xcd   : > { %s1170_s15 = smov %s812_s16  ;;  %s1171_s16 = smov %s816_s17 }
  0xce   : > { %s1173_s18 = smov %s828_s20  ;;  %s1174_s19 = smov %s832_s21 }
  0xcf   : > { %s1172_s17 = smov %s1164_s7  ;;  %22 = sbr.rel (!%p20_p3) target bundleno = 11 (0xb), region = 97 }
  0xd0   : > { %s1175_s20 = smov %s1165_s6 }
  0xd1   : > { %s1176_s21 = smov %s1166_s10 }
  0xd6   :  { %409 = vsyncpa [#allocation3], 1 }
  0xd7   :  { %411 = vsyncpa [#allocation3 + $0x1], 1 }
  0xd8   :  { %412 = vsyncpa [#allocation4], 1 }
  0xd9   :  { %414 = vsyncpa [#allocation4 + $0x1], 1 }
  0xda   :  { %415 = vsyncpa [#allocation7], 1 }
  0xdb   :  { %417 = vsyncpa [#allocation7 + $0x1], 1 }

</bundles_post_ra>
